<compile_context>
chip_gen: v7x
topology: tpu7x:2x2x1
jax: 0.10.0
libtpu: 0.0.40
codegen_flags: <defaults>
</compile_context>

<pallas_src>
from functools import partial

import jax
import jax.numpy as jnp
from jax.experimental import pallas as pl
from jax.experimental.pallas import tpu as pltpu

# ---- config (AcousticConfig fields used by forward) -------------------------
TEXT_EMB_DIM = 8
COND_DIM = 2              # f0 + energy
SPEAKER_DIM = 4
HIDDEN = 32
NUM_LAYERS = 2
KERNEL_SIZE = 3
MEL_DIM = 80
LAYER_SCALE_INIT = 1e-1

TOTAL_COND = COND_DIM + SPEAKER_DIM            # 6
IN_CH = TEXT_EMB_DIM + TOTAL_COND              # 14
FILM_W = NUM_LAYERS * 2 * HIDDEN               # 128
MEL_PAD = ((MEL_DIM + 127) // 128) * 128       # 128: lane-dense output slab
H3 = KERNEL_SIZE * HIDDEN                      # 96: fused 3-tap conv contraction

B = 2
T = 16

# ---- bf16 matmul-weight slab layout [RW, 128] (16-row-aligned sections) -----
OFF_FW = 0                                     # FiLM weight over packed act [14,128]
OFF_WOUT = 16                                  # output proj (padded)        [32,128]
OFF_WIN = 48                                   # input proj                  [14, 32]
OFF_C1W = 64                                   # fused conv1 weights  [L*96, 32]
OFF_C2W = OFF_C1W + NUM_LAYERS * H3            # fused conv2 weights  [L*96, 32]
RW = OFF_C2W + NUM_LAYERS * H3                 # 448

# ---- f32 bias/scale slab layout [RV, 128] (8-row-aligned sections) ----------
OFF_FB = 0                                     # FiLM bias      [1,128]
OFF_BOUT = 8                                   # output bias    [1,128] (padded)
OFF_BIN = 16                                   # input-proj bias[1, 32]
OFF_C1B = 24                                   # conv1 bias, layer l at row 24+8l
OFF_C2B = OFF_C1B + 8 * NUM_LAYERS             # conv2 bias, layer l at row 40+8l
OFF_LS = OFF_C2B + 8 * NUM_LAYERS              # layer scale, layer l at row 56+8l
RV = OFF_LS + 8 * NUM_LAYERS                   # 72


# ---- kernel ------------------------------------------------------------------
def acoustic_kernel(act_ref, w_ref, v_ref, mel_ref, *, seq_len, batch):
    n = batch * seq_len

    act = act_ref[...]                              # [N, 14] f32 (text|f0|en|spk)
    act_b = act.astype(jnp.bfloat16)                # MXU operands in bf16, acc f32

    # ---- input projection + FiLM (layer-invariant): 2 tiny dots ----
    w_in = w_ref[OFF_WIN:OFF_WIN + IN_CH, :HIDDEN]  # [14, 32] bf16
    b_in = v_ref[OFF_BIN:OFF_BIN + 1, :HIDDEN]      # [1, 32]  f32
    h = jnp.dot(act_b, w_in, preferred_element_type=jnp.float32) + b_in

    fw = w_ref[OFF_FW:OFF_FW + IN_CH, :]            # [14, 128] bf16 (text rows = 0)
    fb = v_ref[OFF_FB:OFF_FB + 1, :]                # [1, 128]  f32
    film = jnp.dot(act_b, fw, preferred_element_type=jnp.float32) + fb

    # ---- validity masks for the 'same' k=3 conv taps: zero the padding taps at
    #      sequence edges and forbid leakage across the flattened batch boundary ----
    row = jax.lax.broadcasted_iota(jnp.int32, (n, HIDDEN), 0)

    def valid(d):
        ok = jnp.zeros((n, HIDDEN), jnp.float32)
        for b in range(batch):
            lo = b * seq_len + max(0, -d)
            hi = b * seq_len + seq_len - max(0, d)
            ok = ok + jnp.logical_and(row >= lo, row < hi).astype(jnp.float32)
        return ok

    m_m1 = valid(-1)
    m_p1 = valid(+1)

    def taps3(x):                                   # [N,H] -> [N,3H]: (x[t-1], x[t], x[t+1])
        xm1 = pltpu.roll(x, 1, axis=0) * m_m1       # out[r] = x[r-1]
        xp1 = pltpu.roll(x, n - 1, axis=0) * m_p1   # out[r] = x[r+1]
        return jnp.concatenate([xm1, x, xp1], axis=1)

    def conv3(x, w_row, b_row):                     # fused 3-tap 'same' conv = one dot
        w = w_ref[w_row:w_row + H3, :HIDDEN]        # [96, 32] bf16
        y = jnp.dot(taps3(x).astype(jnp.bfloat16), w,
                    preferred_element_type=jnp.float32)
        return y + v_ref[b_row:b_row + 1, :HIDDEN]

    # ---- residual FiLM conv blocks (dropout / stochastic depth = identity) ----
    for l in range(NUM_LAYERS):
        base = 2 * HIDDEN * l
        gamma = film[:, base:base + HIDDEN]
        beta = film[:, base + HIDDEN:base + 2 * HIDDEN]
        ls = v_ref[OFF_LS + 8 * l:OFF_LS + 8 * l + 1, :HIDDEN]   # [1, 32]

        y = conv3(h, OFF_C1W + l * H3, OFF_C1B + 8 * l)
        y = y * (1.0 + gamma) + beta                # FiLM
        y = jax.nn.gelu(y)                          # TODO(synk): tanh approx (torch: erf)
        y = conv3(y, OFF_C2W + l * H3, OFF_C2B + 8 * l)
        h = h + y * ls                              # LayerScale + residual

    # ---- output projection, lane-dense [N, 128] unmasked store ----
    w_out = w_ref[OFF_WOUT:OFF_WOUT + HIDDEN, :]    # [32, 128] bf16 (80 real cols)
    b_out = v_ref[OFF_BOUT:OFF_BOUT + 1, :]         # [1, 128]  f32
    mel_ref[...] = (jnp.dot(h.astype(jnp.bfloat16), w_out,
                            preferred_element_type=jnp.float32)
                    + b_out).astype(mel_ref.dtype)


# ---- one-time weight packing into the two kernel slabs ------------------------
def prepare_params(params):
    (w_in, b_in, c1w, c1b, filmw, filmb, c2w, c2b, ls, w_out, b_out) = params

    # FiLM weight lifted onto the packed 14-col activation (text rows are zero),
    # all layers side by side: [14, L*2H].
    fw_cond = jnp.transpose(filmw, (1, 0, 2)).reshape(TOTAL_COND, FILM_W)
    fw_full = jnp.zeros((IN_CH, FILM_W), jnp.float32).at[TEXT_EMB_DIM:].set(fw_cond)
    fb_full = filmb.reshape(1, FILM_W)

    # lane-dense output projection: pad 80 -> 128
    w_out_p = jnp.pad(w_out, ((0, 0), (0, MEL_PAD - MEL_DIM)))
    b_out_p = jnp.pad(b_out, ((0, 0), (0, MEL_PAD - MEL_DIM)))

    # fused 3-tap conv weights: [L, K, H, H] -> [L*3H, H], taps stacked
    # in (x[t-1], x[t], x[t+1]) order.
    c1w_f = c1w.reshape(NUM_LAYERS * H3, HIDDEN)
    c2w_f = c2w.reshape(NUM_LAYERS * H3, HIDDEN)

    # --- bf16 matmul-weight slab ---
    wslab = jnp.zeros((RW, 128), jnp.float32)
    wslab = wslab.at[OFF_FW:OFF_FW + IN_CH, :].set(fw_full)
    wslab = wslab.at[OFF_WOUT:OFF_WOUT + HIDDEN, :].set(w_out_p)
    wslab = wslab.at[OFF_WIN:OFF_WIN + IN_CH, :HIDDEN].set(w_in)
    wslab = wslab.at[OFF_C1W:OFF_C1W + NUM_LAYERS * H3, :HIDDEN].set(c1w_f)
    wslab = wslab.at[OFF_C2W:OFF_C2W + NUM_LAYERS * H3, :HIDDEN].set(c2w_f)
    wslab = wslab.astype(jnp.bfloat16)

    # --- f32 bias/scale slab ---
    vslab = jnp.zeros((RV, 128), jnp.float32)
    vslab = vslab.at[OFF_FB:OFF_FB + 1, :].set(fb_full)
    vslab = vslab.at[OFF_BOUT:OFF_BOUT + 1, :].set(b_out_p)
    vslab = vslab.at[OFF_BIN:OFF_BIN + 1, :HIDDEN].set(b_in)
    for l in range(NUM_LAYERS):
        vslab = vslab.at[OFF_C1B + 8 * l, :HIDDEN].set(c1b[l])
        vslab = vslab.at[OFF_C2B + 8 * l, :HIDDEN].set(c2b[l])
        vslab = vslab.at[OFF_LS + 8 * l, :HIDDEN].set(ls[l])

    return wslab, vslab


# ---- forward wrapper -----------------------------------------------------------
@jax.jit
def acoustic_forward(text_emb, f0, energy, speaker, wslab, vslab):
    b_sz, seq_len, _ = text_emb.shape
    n = b_sz * seq_len

    # pack per-timestep activations [text(8) | f0 | energy | spk(4)] -> one [N,14] DMA
    spk_t = jnp.broadcast_to(speaker[:, None, :], (b_sz, seq_len, SPEAKER_DIM))
    act = jnp.concatenate([text_emb, f0[..., None], energy[..., None], spk_t],
                          axis=-1).reshape(n, IN_CH)

    kern = partial(acoustic_kernel, seq_len=seq_len, batch=b_sz)
    vmem = pl.BlockSpec(memory_space=pltpu.MemorySpace.VMEM)

    mel_pad = pl.pallas_call(
        kern,
        out_shape=jax.ShapeDtypeStruct((n, MEL_PAD), jnp.float32),
        in_specs=[vmem, vmem, vmem],
        out_specs=vmem,
    )(act, wslab, vslab)

    return mel_pad.reshape(b_sz, seq_len, MEL_PAD)[:, :, :MEL_DIM]


# ---- deterministic parameter init (shapes match the nn.Module's __init__) ----
def init_params(key):
    ks = jax.random.split(key, 10)
    s = 0.1
    # input_proj Conv1d(14, H, 1): torch weight [H, 14, 1] -> [14, H]
    w_in = jax.random.normal(ks[0], (IN_CH, HIDDEN), jnp.float32) * s
    b_in = jax.random.normal(ks[1], (1, HIDDEN), jnp.float32) * s
    # block conv weights, torch [C_out, C_in, k] -> ours [L, k, C_in, C_out]
    c1w = jax.random.normal(ks[2], (NUM_LAYERS, KERNEL_SIZE, HIDDEN, HIDDEN), jnp.float32) * s
    c1b = jax.random.normal(ks[3], (NUM_LAYERS, HIDDEN), jnp.float32) * s
    filmw = jax.random.normal(ks[4], (NUM_LAYERS, TOTAL_COND, 2 * HIDDEN), jnp.float32) * s
    filmb = jax.random.normal(ks[5], (NUM_LAYERS, 2 * HIDDEN), jnp.float32) * s
    c2w = jax.random.normal(ks[6], (NUM_LAYERS, KERNEL_SIZE, HIDDEN, HIDDEN), jnp.float32) * s
    c2b = jax.random.normal(ks[7], (NUM_LAYERS, HIDDEN), jnp.float32) * s
    ls = jnp.full((NUM_LAYERS, HIDDEN), LAYER_SCALE_INIT, jnp.float32)
    # output_proj Conv1d(H, 80, 1): torch weight [80, H, 1] -> [H, 80]
    w_out = jax.random.normal(ks[8], (HIDDEN, MEL_DIM), jnp.float32) * s
    b_out = jax.random.normal(ks[9], (1, MEL_DIM), jnp.float32) * s
    return (w_in, b_in, c1w, c1b, filmw, filmb, c2w, c2b, ls, w_out, b_out)


# ---- pure-JAX reference (f32) for a numerical sanity check ---------------------
def ref_forward(params, text_emb, f0, energy, speaker):
    (w_in, b_in, c1w, c1b, filmw, filmb, c2w, c2b, ls, w_out, b_out) = params
    b_sz, seq_len, _ = text_emb.shape
    spk_t = jnp.broadcast_to(speaker[:, None, :], (b_sz, seq_len, SPEAKER_DIM))
    x = jnp.concatenate([text_emb, f0[..., None], energy[..., None], spk_t], axis=-1)
    cond = x[..., TEXT_EMB_DIM:]
    h = jnp.einsum('btc,ch->bth', x, w_in) + b_in

    def conv(z, w, b):                      # 'same' k=3 conv, taps (t-1, t, t+1)
        zp = jnp.pad(z, ((0, 0), (1, 1), (0, 0)))
        out = (jnp.einsum('bth,ho->bto', zp[:, :-2], w[0])
               + jnp.einsum('bth,ho->bto', zp[:, 1:-1], w[1])
               + jnp.einsum('bth,ho->bto', zp[:, 2:], w[2]))
        return out + b

    for l in range(NUM_LAYERS):
        film = jnp.einsum('btc,ch->bth', cond, filmw[l]) + filmb[l]
        gamma, beta = film[..., :HIDDEN], film[..., HIDDEN:]
        y = conv(h, c1w[l], c1b[l])
        y = y * (1.0 + gamma) + beta
        y = jax.nn.gelu(y)
        y = conv(y, c2w[l], c2b[l])
        h = h + y * ls[l]
    return jnp.einsum('bth,hm->btm', h, w_out) + b_out


if __name__ == "__main__":
    key = jax.random.PRNGKey(0)
    k_te, k_f0, k_en, k_sp, k_p = jax.random.split(key, 5)

    text_emb = jax.random.normal(k_te, (B, T, TEXT_EMB_DIM), jnp.float32)
    f0 = jax.random.normal(k_f0, (B, T), jnp.float32)
    energy = jax.random.normal(k_en, (B, T), jnp.float32)
    speaker = jax.random.normal(k_sp, (B, SPEAKER_DIM), jnp.float32)

    params = init_params(k_p)
    wslab, vslab = prepare_params(params)      # one-time kernel-layout packing

    mel = acoustic_forward(text_emb, f0, energy, speaker, wslab, vslab)
    mel = jax.block_until_ready(mel)
    assert mel.shape == (B, T, MEL_DIM), mel.shape
    assert bool(jnp.all(jnp.isfinite(mel)))

    ref = ref_forward(params, text_emb, f0, energy, speaker)
    max_err = float(jnp.max(jnp.abs(mel - ref)))
    assert max_err < 5e-2, max_err             # bf16 MXU operands, f32 accumulate
    print("KERNEL_OK")
</pallas_src>

<mosaic_0001>
module attributes {stable_mosaic.version = 11 : i64} {
  func.func @acoustic_kernel(%arg0: memref<32x14xf32, #tpu.memory_space<vmem>>, %arg1: memref<448x128xbf16, #tpu.memory_space<vmem>>, %arg2: memref<72x128xf32, #tpu.memory_space<vmem>>, %arg3: memref<32x128xf32, #tpu.memory_space<vmem>>) attributes {dimension_semantics = [], scalar_prefetch = 0 : i64, scratch_operands = 0 : i64, tpu.core_type = #tpu.core_type<tc>} {
    %c0 = arith.constant 0 : index
    %c0_0 = arith.constant 0 : index
    %0 = vector.load %arg0[%c0, %c0_0] : memref<32x14xf32, #tpu.memory_space<vmem>>, vector<32x14xf32>
    %1 = arith.truncf %0 : vector<32x14xf32> to vector<32x14xbf16>
    %c48 = arith.constant 48 : index
    %c0_1 = arith.constant 0 : index
    %2 = vector.load %arg1[%c48, %c0_1] : memref<448x128xbf16, #tpu.memory_space<vmem>>, vector<14x32xbf16>
    %c16 = arith.constant 16 : index
    %c0_2 = arith.constant 0 : index
    %3 = vector.load %arg2[%c16, %c0_2] : memref<72x128xf32, #tpu.memory_space<vmem>>, vector<1x32xf32>
    %cst = arith.constant dense<0.000000e+00> : vector<32x32xf32>
    %4 = tpu.matmul %1, %2, %cst {dimension_numbers = #tpu.dot_dimension_numbers<[1], [0], [0], [1], [0, 0, 1, 1], [], []>} : vector<32x14xbf16>, vector<14x32xbf16>, vector<32x32xf32> -> vector<32x32xf32>
    %5 = vector.broadcast %3 : vector<1x32xf32> to vector<32x32xf32>
    %6 = arith.addf %4, %5 : vector<32x32xf32>
    %c0_3 = arith.constant 0 : index
    %c0_4 = arith.constant 0 : index
    %7 = vector.load %arg1[%c0_3, %c0_4] : memref<448x128xbf16, #tpu.memory_space<vmem>>, vector<14x128xbf16>
    %c0_5 = arith.constant 0 : index
    %c0_6 = arith.constant 0 : index
    %8 = vector.load %arg2[%c0_5, %c0_6] : memref<72x128xf32, #tpu.memory_space<vmem>>, vector<1x128xf32>
    %cst_7 = arith.constant dense<0.000000e+00> : vector<32x128xf32>
    %9 = tpu.matmul %1, %7, %cst_7 {dimension_numbers = #tpu.dot_dimension_numbers<[1], [0], [0], [1], [0, 0, 1, 1], [], []>} : vector<32x14xbf16>, vector<14x128xbf16>, vector<32x128xf32> -> vector<32x128xf32>
    %10 = vector.broadcast %8 : vector<1x128xf32> to vector<32x128xf32>
    %11 = arith.addf %9, %10 : vector<32x128xf32>
    %12 = tpu.iota {dimensions = array<i32: 0>} : vector<32x32xi32>
    %cst_8 = arith.constant 0.000000e+00 : f32
    %13 = vector.broadcast %cst_8 : f32 to vector<32x32xf32>
    %c1_i32 = arith.constant 1 : i32
    %14 = vector.broadcast %c1_i32 : i32 to vector<32x32xi32>
    %15 = arith.cmpi sge, %12, %14 : vector<32x32xi32>
    %c16_i32 = arith.constant 16 : i32
    %16 = vector.broadcast %c16_i32 : i32 to vector<32x32xi32>
    %17 = arith.cmpi slt, %12, %16 : vector<32x32xi32>
    %18 = arith.andi %15, %17 : vector<32x32xi1>
    %19 = arith.extui %18 : vector<32x32xi1> to vector<32x32xi32>
    %20 = arith.sitofp %19 : vector<32x32xi32> to vector<32x32xf32>
    %21 = arith.addf %13, %20 : vector<32x32xf32>
    %c17_i32 = arith.constant 17 : i32
    %22 = vector.broadcast %c17_i32 : i32 to vector<32x32xi32>
    %23 = arith.cmpi sge, %12, %22 : vector<32x32xi32>
    %c32_i32 = arith.constant 32 : i32
    %24 = vector.broadcast %c32_i32 : i32 to vector<32x32xi32>
    %25 = arith.cmpi slt, %12, %24 : vector<32x32xi32>
    %26 = arith.andi %23, %25 : vector<32x32xi1>
    %27 = arith.extui %26 : vector<32x32xi1> to vector<32x32xi32>
    %28 = arith.sitofp %27 : vector<32x32xi32> to vector<32x32xf32>
    %29 = arith.addf %21, %28 : vector<32x32xf32>
    %cst_9 = arith.constant 0.000000e+00 : f32
    %30 = vector.broadcast %cst_9 : f32 to vector<32x32xf32>
    %c0_i32 = arith.constant 0 : i32
    %31 = vector.broadcast %c0_i32 : i32 to vector<32x32xi32>
    %32 = arith.cmpi sge, %12, %31 : vector<32x32xi32>
    %c15_i32 = arith.constant 15 : i32
    %33 = vector.broadcast %c15_i32 : i32 to vector<32x32xi32>
    %34 = arith.cmpi slt, %12, %33 : vector<32x32xi32>
    %35 = arith.andi %32, %34 : vector<32x32xi1>
    %36 = arith.extui %35 : vector<32x32xi1> to vector<32x32xi32>
    %37 = arith.sitofp %36 : vector<32x32xi32> to vector<32x32xf32>
    %38 = arith.addf %30, %37 : vector<32x32xf32>
    %c16_i32_10 = arith.constant 16 : i32
    %39 = vector.broadcast %c16_i32_10 : i32 to vector<32x32xi32>
    %40 = arith.cmpi sge, %12, %39 : vector<32x32xi32>
    %c31_i32 = arith.constant 31 : i32
    %41 = vector.broadcast %c31_i32 : i32 to vector<32x32xi32>
    %42 = arith.cmpi slt, %12, %41 : vector<32x32xi32>
    %43 = arith.andi %40, %42 : vector<32x32xi1>
    %44 = arith.extui %43 : vector<32x32xi1> to vector<32x32xi32>
    %45 = arith.sitofp %44 : vector<32x32xi32> to vector<32x32xf32>
    %46 = arith.addf %38, %45 : vector<32x32xf32>
    %47 = vector.extract_strided_slice %11 {offsets = [0, 0], sizes = [32, 32], strides = [1, 1]} : vector<32x128xf32> to vector<32x32xf32>
    %48 = vector.extract_strided_slice %11 {offsets = [0, 32], sizes = [32, 32], strides = [1, 1]} : vector<32x128xf32> to vector<32x32xf32>
    %c56 = arith.constant 56 : index
    %c0_11 = arith.constant 0 : index
    %49 = vector.load %arg2[%c56, %c0_11] : memref<72x128xf32, #tpu.memory_space<vmem>>, vector<1x32xf32>
    %c64 = arith.constant 64 : index
    %c0_12 = arith.constant 0 : index
    %50 = vector.load %arg1[%c64, %c0_12] : memref<448x128xbf16, #tpu.memory_space<vmem>>, vector<96x32xbf16>
    %c1_i32_13 = arith.constant 1 : i32
    %51 = tpu.dynamic_rotate %6 by %c1_i32_13 dim 0 : vector<32x32xf32>, i32 -> vector<32x32xf32>
    %52 = arith.mulf %51, %29 : vector<32x32xf32>
    %c31_i32_14 = arith.constant 31 : i32
    %53 = tpu.dynamic_rotate %6 by %c31_i32_14 dim 0 : vector<32x32xf32>, i32 -> vector<32x32xf32>
    %54 = arith.mulf %53, %46 : vector<32x32xf32>
    %55 = tpu.concatenate %52, %6, %54 in 1 : vector<32x32xf32>, vector<32x32xf32>, vector<32x32xf32> -> vector<32x96xf32>
    %56 = arith.truncf %55 : vector<32x96xf32> to vector<32x96xbf16>
    %cst_15 = arith.constant dense<0.000000e+00> : vector<32x32xf32>
    %57 = tpu.matmul %56, %50, %cst_15 {dimension_numbers = #tpu.dot_dimension_numbers<[1], [0], [0], [1], [0, 0, 1, 1], [], []>} : vector<32x96xbf16>, vector<96x32xbf16>, vector<32x32xf32> -> vector<32x32xf32>
    %c24 = arith.constant 24 : index
    %c0_16 = arith.constant 0 : index
    %58 = vector.load %arg2[%c24, %c0_16] : memref<72x128xf32, #tpu.memory_space<vmem>>, vector<1x32xf32>
    %59 = vector.broadcast %58 : vector<1x32xf32> to vector<32x32xf32>
    %60 = arith.addf %57, %59 : vector<32x32xf32>
    %cst_17 = arith.constant 1.000000e+00 : f32
    %61 = vector.broadcast %cst_17 : f32 to vector<32x32xf32>
    %62 = arith.addf %61, %47 : vector<32x32xf32>
    %63 = arith.mulf %60, %62 : vector<32x32xf32>
    %64 = arith.addf %63, %48 : vector<32x32xf32>
    %65 = arith.mulf %64, %64 : vector<32x32xf32>
    %66 = arith.mulf %64, %65 : vector<32x32xf32>
    %cst_18 = arith.constant 4.471500e-02 : f32
    %67 = vector.broadcast %cst_18 : f32 to vector<32x32xf32>
    %68 = arith.mulf %67, %66 : vector<32x32xf32>
    %69 = arith.addf %64, %68 : vector<32x32xf32>
    %cst_19 = arith.constant 0.797884583 : f32
    %70 = vector.broadcast %cst_19 : f32 to vector<32x32xf32>
    %71 = arith.mulf %70, %69 : vector<32x32xf32>
    %72 = math.tanh %71 : vector<32x32xf32>
    %cst_20 = arith.constant 1.000000e+00 : f32
    %73 = vector.broadcast %cst_20 : f32 to vector<32x32xf32>
    %74 = arith.addf %73, %72 : vector<32x32xf32>
    %cst_21 = arith.constant 5.000000e-01 : f32
    %75 = vector.broadcast %cst_21 : f32 to vector<32x32xf32>
    %76 = arith.mulf %75, %74 : vector<32x32xf32>
    %77 = arith.mulf %64, %76 : vector<32x32xf32>
    %c256 = arith.constant 256 : index
    %c0_22 = arith.constant 0 : index
    %78 = vector.load %arg1[%c256, %c0_22] : memref<448x128xbf16, #tpu.memory_space<vmem>>, vector<96x32xbf16>
    %c1_i32_23 = arith.constant 1 : i32
    %79 = tpu.dynamic_rotate %77 by %c1_i32_23 dim 0 : vector<32x32xf32>, i32 -> vector<32x32xf32>
    %80 = arith.mulf %79, %29 : vector<32x32xf32>
    %c31_i32_24 = arith.constant 31 : i32
    %81 = tpu.dynamic_rotate %77 by %c31_i32_24 dim 0 : vector<32x32xf32>, i32 -> vector<32x32xf32>
    %82 = arith.mulf %81, %46 : vector<32x32xf32>
    %83 = tpu.concatenate %80, %77, %82 in 1 : vector<32x32xf32>, vector<32x32xf32>, vector<32x32xf32> -> vector<32x96xf32>
    %84 = arith.truncf %83 : vector<32x96xf32> to vector<32x96xbf16>
    %cst_25 = arith.constant dense<0.000000e+00> : vector<32x32xf32>
    %85 = tpu.matmul %84, %78, %cst_25 {dimension_numbers = #tpu.dot_dimension_numbers<[1], [0], [0], [1], [0, 0, 1, 1], [], []>} : vector<32x96xbf16>, vector<96x32xbf16>, vector<32x32xf32> -> vector<32x32xf32>
    %c40 = arith.constant 40 : index
    %c0_26 = arith.constant 0 : index
    %86 = vector.load %arg2[%c40, %c0_26] : memref<72x128xf32, #tpu.memory_space<vmem>>, vector<1x32xf32>
    %87 = vector.broadcast %86 : vector<1x32xf32> to vector<32x32xf32>
    %88 = arith.addf %85, %87 : vector<32x32xf32>
    %89 = vector.broadcast %49 : vector<1x32xf32> to vector<32x32xf32>
    %90 = arith.mulf %88, %89 : vector<32x32xf32>
    %91 = arith.addf %6, %90 : vector<32x32xf32>
    %92 = vector.extract_strided_slice %11 {offsets = [0, 64], sizes = [32, 32], strides = [1, 1]} : vector<32x128xf32> to vector<32x32xf32>
    %93 = vector.extract_strided_slice %11 {offsets = [0, 96], sizes = [32, 32], strides = [1, 1]} : vector<32x128xf32> to vector<32x32xf32>
    %c64_27 = arith.constant 64 : index
    %c0_28 = arith.constant 0 : index
    %94 = vector.load %arg2[%c64_27, %c0_28] : memref<72x128xf32, #tpu.memory_space<vmem>>, vector<1x32xf32>
    %c160 = arith.constant 160 : index
    %c0_29 = arith.constant 0 : index
    %95 = vector.load %arg1[%c160, %c0_29] : memref<448x128xbf16, #tpu.memory_space<vmem>>, vector<96x32xbf16>
    %c1_i32_30 = arith.constant 1 : i32
    %96 = tpu.dynamic_rotate %91 by %c1_i32_30 dim 0 : vector<32x32xf32>, i32 -> vector<32x32xf32>
    %97 = arith.mulf %96, %29 : vector<32x32xf32>
    %c31_i32_31 = arith.constant 31 : i32
    %98 = tpu.dynamic_rotate %91 by %c31_i32_31 dim 0 : vector<32x32xf32>, i32 -> vector<32x32xf32>
    %99 = arith.mulf %98, %46 : vector<32x32xf32>
    %100 = tpu.concatenate %97, %91, %99 in 1 : vector<32x32xf32>, vector<32x32xf32>, vector<32x32xf32> -> vector<32x96xf32>
    %101 = arith.truncf %100 : vector<32x96xf32> to vector<32x96xbf16>
    %cst_32 = arith.constant dense<0.000000e+00> : vector<32x32xf32>
    %102 = tpu.matmul %101, %95, %cst_32 {dimension_numbers = #tpu.dot_dimension_numbers<[1], [0], [0], [1], [0, 0, 1, 1], [], []>} : vector<32x96xbf16>, vector<96x32xbf16>, vector<32x32xf32> -> vector<32x32xf32>
    %c32 = arith.constant 32 : index
    %c0_33 = arith.constant 0 : index
    %103 = vector.load %arg2[%c32, %c0_33] : memref<72x128xf32, #tpu.memory_space<vmem>>, vector<1x32xf32>
    %104 = vector.broadcast %103 : vector<1x32xf32> to vector<32x32xf32>
    %105 = arith.addf %102, %104 : vector<32x32xf32>
    %cst_34 = arith.constant 1.000000e+00 : f32
    %106 = vector.broadcast %cst_34 : f32 to vector<32x32xf32>
    %107 = arith.addf %106, %92 : vector<32x32xf32>
    %108 = arith.mulf %105, %107 : vector<32x32xf32>
    %109 = arith.addf %108, %93 : vector<32x32xf32>
    %110 = arith.mulf %109, %109 : vector<32x32xf32>
    %111 = arith.mulf %109, %110 : vector<32x32xf32>
    %cst_35 = arith.constant 4.471500e-02 : f32
    %112 = vector.broadcast %cst_35 : f32 to vector<32x32xf32>
    %113 = arith.mulf %112, %111 : vector<32x32xf32>
    %114 = arith.addf %109, %113 : vector<32x32xf32>
    %cst_36 = arith.constant 0.797884583 : f32
    %115 = vector.broadcast %cst_36 : f32 to vector<32x32xf32>
    %116 = arith.mulf %115, %114 : vector<32x32xf32>
    %117 = math.tanh %116 : vector<32x32xf32>
    %cst_37 = arith.constant 1.000000e+00 : f32
    %118 = vector.broadcast %cst_37 : f32 to vector<32x32xf32>
    %119 = arith.addf %118, %117 : vector<32x32xf32>
    %cst_38 = arith.constant 5.000000e-01 : f32
    %120 = vector.broadcast %cst_38 : f32 to vector<32x32xf32>
    %121 = arith.mulf %120, %119 : vector<32x32xf32>
    %122 = arith.mulf %109, %121 : vector<32x32xf32>
    %c352 = arith.constant 352 : index
    %c0_39 = arith.constant 0 : index
    %123 = vector.load %arg1[%c352, %c0_39] : memref<448x128xbf16, #tpu.memory_space<vmem>>, vector<96x32xbf16>
    %c1_i32_40 = arith.constant 1 : i32
    %124 = tpu.dynamic_rotate %122 by %c1_i32_40 dim 0 : vector<32x32xf32>, i32 -> vector<32x32xf32>
    %125 = arith.mulf %124, %29 : vector<32x32xf32>
    %c31_i32_41 = arith.constant 31 : i32
    %126 = tpu.dynamic_rotate %122 by %c31_i32_41 dim 0 : vector<32x32xf32>, i32 -> vector<32x32xf32>
    %127 = arith.mulf %126, %46 : vector<32x32xf32>
    %128 = tpu.concatenate %125, %122, %127 in 1 : vector<32x32xf32>, vector<32x32xf32>, vector<32x32xf32> -> vector<32x96xf32>
    %129 = arith.truncf %128 : vector<32x96xf32> to vector<32x96xbf16>
    %cst_42 = arith.constant dense<0.000000e+00> : vector<32x32xf32>
    %130 = tpu.matmul %129, %123, %cst_42 {dimension_numbers = #tpu.dot_dimension_numbers<[1], [0], [0], [1], [0, 0, 1, 1], [], []>} : vector<32x96xbf16>, vector<96x32xbf16>, vector<32x32xf32> -> vector<32x32xf32>
    %c48_43 = arith.constant 48 : index
    %c0_44 = arith.constant 0 : index
    %131 = vector.load %arg2[%c48_43, %c0_44] : memref<72x128xf32, #tpu.memory_space<vmem>>, vector<1x32xf32>
    %132 = vector.broadcast %131 : vector<1x32xf32> to vector<32x32xf32>
    %133 = arith.addf %130, %132 : vector<32x32xf32>
    %134 = vector.broadcast %94 : vector<1x32xf32> to vector<32x32xf32>
    %135 = arith.mulf %133, %134 : vector<32x32xf32>
    %136 = arith.addf %91, %135 : vector<32x32xf32>
    %c16_45 = arith.constant 16 : index
    %c0_46 = arith.constant 0 : index
    %137 = vector.load %arg1[%c16_45, %c0_46] : memref<448x128xbf16, #tpu.memory_space<vmem>>, vector<32x128xbf16>
    %c8 = arith.constant 8 : index
    %c0_47 = arith.constant 0 : index
    %138 = vector.load %arg2[%c8, %c0_47] : memref<72x128xf32, #tpu.memory_space<vmem>>, vector<1x128xf32>
    %139 = arith.truncf %136 : vector<32x32xf32> to vector<32x32xbf16>
    %cst_48 = arith.constant dense<0.000000e+00> : vector<32x128xf32>
    %140 = tpu.matmul %139, %137, %cst_48 {dimension_numbers = #tpu.dot_dimension_numbers<[1], [0], [0], [1], [0, 0, 1, 1], [], []>} : vector<32x32xbf16>, vector<32x128xbf16>, vector<32x128xf32> -> vector<32x128xf32>
    %141 = vector.broadcast %138 : vector<1x128xf32> to vector<32x128xf32>
    %142 = arith.addf %140, %141 : vector<32x128xf32>
    %c0_49 = arith.constant 0 : index
    %c0_50 = arith.constant 0 : index
    %143 = vector.load %arg3[%c0_49, %c0_50] : memref<32x128xf32, #tpu.memory_space<vmem>>, vector<32x128xf32>
    tpu.vector_store %arg3[%c0_49, %c0_50], %142 {strides = array<i32>} : memref<32x128xf32, #tpu.memory_space<vmem>>, vector<32x128xf32>,
    return
  }
}

</mosaic_0001>

<bundles_post_ra>
// kernel: acoustic_forward.1
= control target key start
LH: loop header
LB: loop body
LE: loop exit
PB: predicated region body
PF: predicated region fallthrough
CT: control target
= control target key end

     0   :  { %vm41_vm0 = vcmask 1046528   ;;  %vm34_vm1 = vcmask 113664   ;;  %s1974_s0 = inlined_call_operand.vmem [shape: f32[32,14], index: 0, kind: input, shape index: {}]   ;;  %s1975_s1 = inlined_call_operand.vmem [shape: bf16[448,128], index: 1, kind: input, shape index: {}]   ;;  %s1976_s2 = inlined_call_operand.vmem [shape: f32[72,128], index: 2, kind: input, shape index: {}]   ;;  %s1977_s3 = inlined_call_operand.hbm [shape: f32[32,128], index: 3, kind: output, shape index: {}]  }
   0x1   :  { %v1490_v0 = vld [vmem:[%s1975_s1 + $0x18] sm:$0x7f]   ;;  %v16_v1 = vld [vmem:[%s1974_s0] sm:$0xff]  ;;  %v17_v2 = vld [vmem:[%s1974_s0 + $0x8] sm:$0xff] }
   0x2   :  { %v18_v3 = vld [vmem:[%s1974_s0 + $0x10] sm:$0xff]  ;;  %1401 = vmatprep.subr.msk.bf16.mxu0 %vm41_vm0, %v1490_v0  ;;  %v43_v4 = vsel %vm41_vm0, %v1490_v0, 0  ;;  %v20_v5 = vpack.c.bf16 %v17_v2, %v16_v1  ;;  %v19_v6 = vld [vmem:[%s1974_s0 + $0x18] sm:$0xff] }
   0x3   :  { %1318 = vmatpush3.bf16.msra.mxu0 %v43_v4  ;;  %v21_v7 = vpack.c.bf16 %v19_v6, %v18_v3 }
   0x4   :  { %1319 = vmatprep.mubr.msk.bf16.mxu0 %vm34_vm1, %v20_v5  ;;  %1325 = vmatprep.mubr.msk.bf16.mxu1 %vm34_vm1, %v20_v5 }
   0x6   :  { %1320 = vmatmul.mubr.msk.bf16.vlgmr.msra.gmra.mrb[0].mxu0 %vm34_vm1, %v21_v7 }
   0x7   :  { %8 = vsyncpa [#allocation3], 0  ;;  %v158_v8 = vlaneseq  ;;  %v1491_v11 = vld [vmem:[%s1975_s1] sm:$0x7f]   ;;  %v1558_v12 = vmov 0.0   ;;  %v1493_v17 = vld [vmem:[%s1975_s1 + $0x28] sm:$0xff]  }
   0x8   :  { %1402 = vmatprep.subr.msk.bf16.mxu1 %vm41_vm0, %v1491_v11  ;;  %v107_v14 = vsel %vm41_vm0, %v1491_v11, 0  ;;  %v1492_v16 = vld [vmem:[%s1975_s1 + $0x20] sm:$0xff]   ;;  %v1494_v18 = vld [vmem:[%s1975_s1 + $0x30] sm:$0xff]   ;;  %v1495_v19 = vld [vmem:[%s1975_s1 + $0x38] sm:$0xff]   ;;  %s1559_s10 = smov 32   ;;  %s1560_s11 = smov 64  }
   0x9   :  { %v1605_v9 = vshrl.u32 %v158_v8, 7  ;;  %1324 = vmatpush3.bf16.msra.mxu1 %v107_v14  ;;  %1329 = vmatprep.subr.bf16.mxu0 %v1492_v16  ;;  %v1220_v20 = vld [vmem:[%s1976_s2 + $0x10] ss:$0 sm:$0xff]  ;;  %v1496_v23 = vld [vmem:[%s1975_s1 + $0x40] sm:$0xff]   ;;  %v1497_v33 = vld [vmem:[%s1975_s1 + $0x48] sm:$0xff]   ;;  %s1561_s14 = smov 96  }
   0xa   :  { %1330 = vmatpush3.bf16.msra.mxu0 %v1492_v16  ;;  %v1224_v49 = vld [vmem:[%s1976_s2] ss:$0 sm:$0xff]  ;;  %vm330_vm8 = vcmask 261120   ;;  %vm335_vm9 = vcmask 523264   ;;  %vm383_vm10 = vcmask 785408  }
   0xb   :  { %vm163_vm2 = vcmp.ge.s32.totalorder %v1605_v9, 1  ;;  %v161_v10 = vadd.s32 16, %v1605_v9  ;;  %1331 = vmatprep.subr.bf16.mxu0 %v1493_v17  ;;  %v160_v21 = vadd.s32 8, %v1605_v9  ;;  %v162_v25 = vadd.s32 24, %v1605_v9 }
   0xc   :  { %v1612_v13 = vsel %vm163_vm2, 1.0, %v1558_v12  ;;  %1326 = vmatmul.mubr.msk.bf16.vlgmr.msra.gmra.mrb[0].mxu1 %vm34_vm1, %v21_v7  ;;  %vm289_vm5 = vcmp.lt.s32.totalorder %v1605_v9, 7  ;;  %vm276_vm7 = vcmp.lt.s32.totalorder %v1605_v9, 1 }
   0xd   :  { %vm189_vm3 = vcmp.ge.s32.totalorder %v161_v10, 17  ;;  %vm216_vm4 = vcmp.lt.s32.totalorder %v160_v21, 15  ;;  %vm242_vm6 = vcmp.lt.s32.totalorder %v162_v25, 31 }
   0xe   :  { %v1616_v15 = vsel %vm189_vm3, 1.0, %v1558_v12  ;;  %1332 = vmatpush3.bf16.msra.mxu0 %v1493_v17  ;;  %v1656_v37 = vsel %vm216_vm4, 1.0, %v1558_v12  ;;  %v1662_v40 = vsel %vm242_vm6, 1.0, %v1558_v12 }
   0xf   :  { %1333 = vmatprep.subr.bf16.mxu0 %v1494_v18 }
  0x12   :  { %1334 = vmatpush3.bf16.msra.mxu0 %v1494_v18 }
  0x13   :  { %1335 = vmatprep.subr.bf16.mxu0 %v1495_v19 }
  0x16   :  { %1336 = vmatpush3.bf16.msra.mxu0 %v1495_v19 }
  0x17   :  { %1337 = vmatprep.subr.bf16.mxu0 %v1496_v23 }
  0x1a   :  { %1338 = vmatpush3.bf16.msra.mxu0 %v1496_v23 }
  0x1b   :  { %1339 = vmatprep.subr.bf16.mxu0 %v1497_v33 }
  0x1e   :  { %1340 = vmatpush3.bf16.msra.mxu0 %v1497_v33  ;;  %v1498_v33 = vld [vmem:[%s1975_s1 + $0x80] sm:$0xff]  }
  0x1f   :  { %1345 = vmatprep.subr.bf16.mxu1 %v1498_v33 }
  0x20   :  { %1346 = vmatpush3.bf16.msra.mxu1 %v1498_v33 }
  0xd9   :  { %v1321_v22 = vpop.f32.mrb[0].mxu0 }
  0xda   :  { %v79_v24 = vpop.f32.mrb[1].mxu0  ;;  %v1639_v26 = vadd.f32 %v1321_v22, %v1220_v20 }
  0xdb   :  { %v1641_v27 = vadd.f32 %v1220_v20, %v79_v24  ;;  %v1322_v28 = vpop.f32.mrb[2].mxu0 }
  0xdc   :  { %v1643_v29 = vadd.f32 %v1322_v28, %v1220_v20  ;;  %v82_v30 = vpop.f32.mrb[3].mxu0  ;;  %v287_v35 = vrot.slane %v1639_v26, 1  ;;  %v274_v1 = vrot.slane %v1639_v26, 7 }
  0xdd   :  { %v1645_v31 = vadd.f32 %v1220_v20, %v82_v30  ;;  %v285_v32 = vrot.slane %v1641_v27, 1  ;;  %v272_v58 = vrot.slane %v1641_v27, 7 }
  0xde   :  { %v288_v34 = vrot.slane %v1643_v29, 1  ;;  %v1415_v43 = vpack.i.bf16 %v1643_v29, %v1639_v26  ;;  %v275_v59 = vrot.slane %v1643_v29, 7 }
  0xdf   :  { %v1410_v36 = vpack.i.bf16 %v1645_v31, %v1641_v27  ;;  %v286_v38 = vrot.slane %v1645_v31, 1  ;;  %v1327_v50 = vpop.f32.mrb[0].mxu1  ;;  %v273_v61 = vrot.slane %v1645_v31, 7 }
  0xe0   :  { %v293_v41 = vsel %vm289_vm5, %v288_v34, %v285_v32  ;;  %v290_v47 = vsel %vm289_vm5, %v287_v35, %v288_v34  ;;  %v1680_v51 = vadd.f32 %v1327_v50, %v1224_v49  ;;  %v143_v52 = vpop.f32.mrb[1].mxu1  ;;  %v280_v62 = vsel %vm276_vm7, %v275_v59, %v272_v58  ;;  %v1499_v34 = vld [vmem:[%s1975_s1 + $0x88] sm:$0xff]  }
  0xe1   :  { %1411 = vrot.lane.b32.xlu0 %v1410_v36, %s1559_s10  ;;  %v291_v39 = vsel %vm289_vm5, %v286_v38, %v287_v35  ;;  %v292_v44 = vsel %vm289_vm5, %v285_v32, %v286_v38  ;;  %v297_v46 = vmul.f32 %v1662_v40, %v293_v41  ;;  %v1328_v53 = vpop.f32.mrb[2].mxu1  ;;  %v1687_v57 = vadd.f32 %v1224_v49, %v143_v52  ;;  %v1500_v35 = vld [vmem:[%s1975_s1 + $0x90] sm:$0xff]   ;;  %v1232_v36 = vld [vmem:[%s1976_s2 + $0x18] ss:$0 sm:$0xff] }
  0xe2   :  { %v295_v42 = vmul.f32 %v1656_v37, %v291_v39  ;;  %v1682_v54 = vadd.f32 %v1328_v53, %v1224_v49  ;;  %v146_v55 = vpop.f32.mrb[3].mxu1  ;;  %v281_v3 = vmul.f32 %v1612_v13, %v280_v62  ;;  %v279_v5 = vsel %vm276_vm7, %v272_v58, %v273_v61  ;;  %1347 = vmatprep.subr.bf16.mxu1 %v1499_v34 }
  0xe3   :  { %v1425_v48 = vpack.i.bf16 %v297_v46, %v290_v47  ;;  %v1685_v56 = vadd.f32 %v1224_v49, %v146_v55  ;;  %v278_v6 = vsel %vm276_vm7, %v273_v61, %v274_v1  ;;  %v277_v21 = vsel %vm276_vm7, %v274_v1, %v275_v59  ;;  %1348 = vmatpush3.bf16.msra.mxu1 %v1499_v34  ;;  %v1502_v34 = vld [vmem:[%s1975_s1 + $0xa0] sm:$0xff]  }
  0xe4   :  { %v1420_v45 = vpack.i.bf16 %v295_v42, %v292_v44  ;;  %v283_v18 = vmul.f32 %v1616_v15, %v278_v6  ;;  %1349 = vmatprep.subr.bf16.mxu1 %v1500_v35  ;;  %v1733_v46 = vadd.f32 1.0, %v1687_v57  ;;  %v1737_v50 = vadd.f32 1.0, %v1682_v54 }
  0xe5   :  { %1416 = vrot.lane.b32.xlu0 %v1415_v43, %s1559_s10  ;;  %v1730_v43 = vadd.f32 1.0, %v1680_v51  ;;  %v1741_v58 = vadd.f32 1.0, %v1685_v56 }
  0xe6   :  { %1421 = vrot.lane.b32.xlu1 %v1420_v45, %s1560_s11 }
  0xe7   :  { %1350 = vmatpush3.bf16.msra.mxu1 %v1500_v35 }
  0xe9   :  { %453 = vrot.lane.b32.xlu0 %v1685_v56, %s1561_s14 }
  0xea   :  { %1426 = vrot.lane.b32.xlu1 %v1425_v48, %s1560_s11 }
  0xed   :  { %451 = vrot.lane.b32.xlu0 %v1687_v57, %s1561_s14 }
  0xee   :  { %455 = vrot.lane.b32.xlu1 %v1680_v51, %s1561_s14 }
  0xf2   :  { %457 = vrot.lane.b32.xlu1 %v1682_v54, %s1561_s14  ;;  %s1562_s14 = smov [#allocation2]  }
  0xf3   :  { %s1209_s15 = sshll.u32 %s1562_s14, 4  ;;  %s1210_s15 = int_to_ptr.vmem [resolvable:$true] %s1209_s15 }
  0xf4   :  { %s1534_s16 = scalar_lea.vmem %s1210_s15, 512  ;;  %p1539_p1 = scmp.lt.s32.totalorder %s1210_s15, %s1210_s15 }
  0xf5   :  { %p1535_p0 = scmp.ne.s32.totalorder %s1210_s15, %s1534_s16  ;;  %p1540_p2 = scmp.lt.s32.totalorder %s1534_s16, %s1534_s16 }
  0xf7   :  { %p1541_p3 = por %p1540_p2, %p1539_p1 }
  0xf9   :  { %p1542_p4 = pnand %p1541_p3, %p1535_p0 }
 0x153   :  { %v1412_v60 = vpop.permute.xlu0 %1411 }
 0x154   :  { %v1414_v63 = vunpack.i.h.bf16 %v1412_v60  ;;  %v1413_v0 = vunpack.i.l.bf16 %v1412_v60 }
 0x156   :  { %v331_v10 = vsel %vm330_vm8, %v281_v3, %v1413_v0  ;;  %v332_v11 = vsel %vm330_vm8, %v279_v5, %v1414_v63 }
 0x157   :  { %v1417_v2 = vpop.permute.xlu0 %1416 }
 0x158   :  { %v1422_v4 = vpop.permute.xlu1 %1421  ;;  %v1419_v12 = vunpack.i.h.bf16 %v1417_v2  ;;  %v1418_v14 = vunpack.i.l.bf16 %v1417_v2 }
 0x159   :  { %v1424_v7 = vunpack.i.h.bf16 %v1422_v4  ;;  %v1423_v8 = vunpack.i.l.bf16 %v1422_v4 }
 0x15a   :  { %v334_v24 = vsel %vm330_vm8, %v277_v21, %v1419_v12  ;;  %v333_v25 = vsel %vm330_vm8, %v283_v18, %v1418_v14 }
 0x15b   :  { %v336_v16 = vsel %vm335_vm9, %v331_v10, %v1423_v8  ;;  %v337_v17 = vsel %vm335_vm9, %v332_v11, %v1424_v7  ;;  %v454_v38 = vpop.permute.xlu0 %453 }
 0x15c   :  { %v340_v19 = vpack.c.bf16 %v337_v17, %v336_v16  ;;  %v1427_v20 = vpop.permute.xlu1 %1426 }
 0x15d   :  { %v1429_v22 = vunpack.i.h.bf16 %v1427_v20  ;;  %v1428_v23 = vunpack.i.l.bf16 %v1427_v20 }
 0x15e   :  { %1341 = vmatprep.mubr.msk.bf16.mxu0 %vm383_vm10, %v340_v19 }
 0x15f   :  { %v339_v28 = vsel %vm335_vm9, %v334_v24, %v1429_v22  ;;  %v338_v30 = vsel %vm335_vm9, %v333_v25, %v1428_v23  ;;  %v452_v60 = vpop.permute.xlu0 %451 }
 0x160   :  { %v341_v32 = vpack.c.bf16 %v339_v28, %v338_v30  ;;  %v456_v39 = vpop.permute.xlu1 %455  ;;  %v1501_v28 = vld [vmem:[%s1975_s1 + $0x98] sm:$0xff]  }
 0x161   :  { %1351 = vmatprep.subr.bf16.mxu1 %v1501_v28 }
 0x162   :  { %1342 = vmatmul.mubr.msk.bf16.vlgmr.msra.gmra.mrb[4].mxu0 %vm383_vm10, %v341_v32  ;;  %1352 = vmatpush3.bf16.msra.mxu1 %v1501_v28 }
 0x163   :  { %1353 = vmatprep.subr.bf16.mxu1 %v1502_v34 }
 0x164   :  { %v458_v62 = vpop.permute.xlu1 %457 }
 0x166   :  { %1354 = vmatpush3.bf16.msra.mxu1 %v1502_v34 }
 0x235   :  { %v1343_v41 = vpop.f32.mrb[4].mxu0 }
 0x236   :  { %v433_v42 = vadd.f32 %v1343_v41, %v1232_v36  ;;  %v424_v44 = vpop.f32.mrb[5].mxu0 }
 0x237   :  { %v425_v45 = vadd.f32 %v1232_v36, %v424_v44  ;;  %v1344_v47 = vpop.f32.mrb[6].mxu0 }
 0x238   :  { %v445_v48 = vmul.f32 %v1730_v43, %v433_v42  ;;  %v436_v49 = vadd.f32 %v1344_v47, %v1232_v36  ;;  %v427_v52 = vpop.f32.mrb[7].mxu0 }
 0x239   :  { %v443_v53 = vmul.f32 %v1733_v46, %v425_v45  ;;  %v428_v55 = vadd.f32 %v1232_v36, %v427_v52 }
 0x23a   :  { %v465_v59 = vadd.f32 %v456_v39, %v445_v48  ;;  %v446_v61 = vmul.f32 %v1737_v50, %v436_v49  ;;  %v1503_v48 = vld [vmem:[%s1975_s1 + $0xa8] sm:$0xff]  }
 0x23b   :  { %v463_v63 = vadd.f32 %v452_v60, %v443_v53  ;;  %v444_v0 = vmul.f32 %v1741_v58, %v428_v55  ;;  %1355 = vmatprep.subr.bf16.mxu1 %v1503_v48 }
 0x23c   :  { %v469_v1 = vmul.f32 %v465_v59, %v465_v59  ;;  %v466_v2 = vadd.f32 %v458_v62, %v446_v61  ;;  %1356 = vmatpush3.bf16.msra.mxu1 %v1503_v48 }
 0x23d   :  { %v467_v3 = vmul.f32 %v463_v63, %v463_v63  ;;  %v464_v4 = vadd.f32 %v454_v38, %v444_v0 }
 0x23e   :  { %v473_v5 = vmul.f32 %v469_v1, %v465_v59  ;;  %v470_v6 = vmul.f32 %v466_v2, %v466_v2 }
 0x23f   :  { %v471_v7 = vmul.f32 %v467_v3, %v463_v63  ;;  %v468_v8 = vmul.f32 %v464_v4, %v464_v4 }
 0x240   :  { %v477_v10 = vmul.f32 0.044715, %v473_v5  ;;  %v474_v11 = vmul.f32 %v470_v6, %v466_v2 }
 0x241   :  { %v475_v12 = vmul.f32 0.044715, %v471_v7  ;;  %v472_v14 = vmul.f32 %v468_v8, %v464_v4 }
 0x242   :  { %v481_v16 = vadd.f32 %v477_v10, %v465_v59  ;;  %v478_v17 = vmul.f32 0.044715, %v474_v11 }
 0x243   :  { %v479_v18 = vadd.f32 %v475_v12, %v463_v63  ;;  %v476_v19 = vmul.f32 0.044715, %v472_v14 }
 0x244   :  { %v485_v20 = vmul.f32 0.7978846, %v481_v16  ;;  %v482_v21 = vadd.f32 %v478_v17, %v466_v2 }
 0x245   :  { %v483_v22 = vmul.f32 0.7978846, %v479_v18  ;;  %v480_v23 = vadd.f32 %v476_v19, %v464_v4 }
 0x246   :  { %1518 = vtanh.f32 %v485_v20  ;;  %v486_v24 = vmul.f32 0.7978846, %v482_v21 }
 0x247   :  { %1520 = vtanh.f32 %v483_v22  ;;  %v484_v25 = vmul.f32 0.7978846, %v480_v23 }
 0x248   :  { %1522 = vtanh.f32 %v486_v24 }
 0x249   :  { %1524 = vtanh.f32 %v484_v25 }
 0x250   :  { %v1519_v30 = vpop.eup %1518 }
 0x251   :  { %v1521_v32 = vpop.eup %1520  ;;  %v493_v33 = vadd.f32 1.0, %v1519_v30 }
 0x252   :  { %v1523_v35 = vpop.eup %1522  ;;  %v491_v36 = vadd.f32 1.0, %v1521_v32 }
 0x253   :  { %v1525_v38 = vpop.eup %1524  ;;  %v494_v39 = vadd.f32 1.0, %v1523_v35  ;;  %v497_v41 = vmul.f32 0.5, %v493_v33 }
 0x254   :  { %v492_v42 = vadd.f32 1.0, %v1525_v38  ;;  %v495_v44 = vmul.f32 0.5, %v491_v36 }
 0x255   :  { %v498_v45 = vmul.f32 0.5, %v494_v39  ;;  %v501_v47 = vmul.f32 %v497_v41, %v465_v59 }
 0x256   :  { %v496_v49 = vmul.f32 0.5, %v492_v42  ;;  %v499_v52 = vmul.f32 %v495_v44, %v463_v63 }
 0x257   :  { %v502_v53 = vmul.f32 %v498_v45, %v466_v2  ;;  %v529_v61 = vrot.slane %v501_v47, 1  ;;  %v517_v3 = vrot.slane %v501_v47, 7 }
 0x258   :  { %v500_v55 = vmul.f32 %v496_v49, %v464_v4  ;;  %v527_v60 = vrot.slane %v499_v52, 1  ;;  %v515_v62 = vrot.slane %v499_v52, 7 }
 0x259   :  { %v1430_v0 = vpack.i.bf16 %v502_v53, %v501_v47  ;;  %v530_v1 = vrot.slane %v502_v53, 1  ;;  %v518_v5 = vrot.slane %v502_v53, 7 }
 0x25a   :  { %v516_v6 = vrot.slane %v500_v55, 7  ;;  %v1435_v7 = vpack.i.bf16 %v500_v55, %v499_v52  ;;  %v528_v59 = vrot.slane %v500_v55, 1  ;;  %v1504_v55 = vld [vmem:[%s1975_s1 + $0x50] sm:$0xff]  }
 0x25b   :  { %1431 = vrot.lane.b32.xlu1 %v1430_v0, %s1559_s10  ;;  %v531_v8 = vsel %vm289_vm5, %v529_v61, %v530_v1  ;;  %v534_v63 = vsel %vm289_vm5, %v530_v1, %v527_v60  ;;  %v519_v2 = vsel %vm276_vm7, %v517_v3, %v518_v5  ;;  %v522_v4 = vsel %vm276_vm7, %v518_v5, %v515_v62  ;;  %v1241_v0 = vld [vmem:[%s1976_s2 + $0x28] ss:$0 sm:$0xff]  ;;  %v1250_v1 = vld [vmem:[%s1976_s2 + $0x38] ss:$0 sm:$0xff] }
 0x25c   :  { %1436 = vrot.lane.b32.xlu0 %v1435_v7, %s1559_s10  ;;  %v538_v10 = vmul.f32 %v1662_v40, %v534_v63  ;;  %v532_v11 = vsel %vm289_vm5, %v528_v59, %v529_v61  ;;  %v533_v12 = vsel %vm289_vm5, %v527_v60, %v528_v59  ;;  %v520_v14 = vsel %vm276_vm7, %v516_v6, %v517_v3  ;;  %v1505_v60 = vld [vmem:[%s1975_s1 + $0x58] sm:$0xff]   ;;  %v1506_v61 = vld [vmem:[%s1975_s1 + $0x60] sm:$0xff]   ;;  %v1508_v7 = vld [vmem:[%s1975_s1 + $0x70] sm:$0xff]  }
 0x25d   :  { %v536_v16 = vmul.f32 %v1656_v37, %v532_v11  ;;  %v521_v17 = vsel %vm276_vm7, %v515_v62, %v516_v6  ;;  %v525_v28 = vmul.f32 %v1616_v15, %v520_v14  ;;  %v523_v32 = vmul.f32 %v1612_v13, %v522_v4  ;;  %1361 = vmatprep.subr.bf16.mxu0 %v1504_v55  ;;  %v1507_v62 = vld [vmem:[%s1975_s1 + $0x68] sm:$0xff]   ;;  %v1509_v14 = vld [vmem:[%s1975_s1 + $0x78] sm:$0xff]  }
 0x25e   :  { %v1445_v18 = vpack.i.bf16 %v538_v10, %v531_v8  ;;  %1362 = vmatpush3.bf16.msra.mxu0 %v1504_v55 }
 0x25f   :  { %v1440_v19 = vpack.i.bf16 %v536_v16, %v533_v12  ;;  %1363 = vmatprep.subr.bf16.mxu0 %v1505_v60 }
 0x260   :  { %1446 = vrot.lane.b32.xlu1 %v1445_v18, %s1560_s11 }
 0x261   :  { %1441 = vrot.lane.b32.xlu0 %v1440_v19, %s1560_s11 }
 0x262   :  { %1364 = vmatpush3.bf16.msra.mxu0 %v1505_v60 }
 0x263   :  { %1365 = vmatprep.subr.bf16.mxu0 %v1506_v61 }
 0x266   :  { %1366 = vmatpush3.bf16.msra.mxu0 %v1506_v61 }
 0x267   :  { %1367 = vmatprep.subr.bf16.mxu0 %v1507_v62 }
 0x26a   :  { %1368 = vmatpush3.bf16.msra.mxu0 %v1507_v62 }
 0x26b   :  { %1369 = vmatprep.subr.bf16.mxu0 %v1508_v7 }
 0x26e   :  { %1370 = vmatpush3.bf16.msra.mxu0 %v1508_v7 }
 0x26f   :  { %1371 = vmatprep.subr.bf16.mxu0 %v1509_v14 }
 0x272   :  { %1372 = vmatpush3.bf16.msra.mxu0 %v1509_v14  ;;  %v1251_v14 = vld [vmem:[%s1976_s2 + $0x20] ss:$0 sm:$0xff] }
 0x2cd   :  { %v1432_v20 = vpop.permute.xlu1 %1431 }
 0x2ce   :  { %v1437_v21 = vpop.permute.xlu0 %1436  ;;  %v1434_v22 = vunpack.i.h.bf16 %v1432_v20  ;;  %v1433_v23 = vunpack.i.l.bf16 %v1432_v20 }
 0x2cf   :  { %v1439_v24 = vunpack.i.h.bf16 %v1437_v21  ;;  %v1438_v25 = vunpack.i.l.bf16 %v1437_v21 }
 0x2d0   :  { %v573_v36 = vsel %vm330_vm8, %v525_v28, %v1433_v23  ;;  %v574_v38 = vsel %vm330_vm8, %v519_v2, %v1434_v22 }
 0x2d1   :  { %v571_v42 = vsel %vm330_vm8, %v523_v32, %v1438_v25  ;;  %v572_v44 = vsel %vm330_vm8, %v521_v17, %v1439_v24 }
 0x2d2   :  { %v1447_v30 = vpop.permute.xlu1 %1446 }
 0x2d3   :  { %v1449_v33 = vunpack.i.h.bf16 %v1447_v30  ;;  %v1448_v34 = vunpack.i.l.bf16 %v1447_v30  ;;  %v1442_v35 = vpop.permute.xlu0 %1441 }
 0x2d4   :  { %v1444_v39 = vunpack.i.h.bf16 %v1442_v35  ;;  %v1443_v41 = vunpack.i.l.bf16 %v1442_v35 }
 0x2d5   :  { %v578_v45 = vsel %vm335_vm9, %v574_v38, %v1449_v33  ;;  %v577_v47 = vsel %vm335_vm9, %v573_v36, %v1448_v34 }
 0x2d6   :  { %v580_v48 = vpack.c.bf16 %v578_v45, %v577_v47  ;;  %v575_v49 = vsel %vm335_vm9, %v571_v42, %v1443_v41  ;;  %v576_v52 = vsel %vm335_vm9, %v572_v44, %v1444_v39 }
 0x2d7   :  { %v579_v53 = vpack.c.bf16 %v576_v52, %v575_v49 }
 0x2d9   :  { %1357 = vmatprep.mubr.msk.bf16.mxu1 %vm383_vm10, %v579_v53 }
 0x2da   :  { %1358 = vmatmul.mubr.msk.bf16.vlgmr.msra.gmra.mrb[4].mxu1 %vm383_vm10, %v580_v48 }
 0x3ad   :  { %v1359_v3 = vpop.f32.mrb[4].mxu1 }
 0x3ae   :  { %v671_v5 = vadd.f32 %v1359_v3, %v1241_v0  ;;  %v662_v6 = vpop.f32.mrb[5].mxu1 }
 0x3af   :  { %v663_v59 = vadd.f32 %v1241_v0, %v662_v6  ;;  %v1360_v8 = vpop.f32.mrb[6].mxu1 }
 0x3b0   :  { %v683_v63 = vmul.f32 %v1250_v1, %v671_v5  ;;  %v674_v2 = vadd.f32 %v1360_v8, %v1241_v0  ;;  %v665_v4 = vpop.f32.mrb[7].mxu1  ;;  %v1510_v8 = vld [vmem:[%s1975_s1 + $0xb0] sm:$0xff]  }
 0x3b1   :  { %v681_v10 = vmul.f32 %v1250_v1, %v663_v59  ;;  %v666_v11 = vadd.f32 %v1241_v0, %v665_v4  ;;  %1377 = vmatprep.subr.bf16.mxu1 %v1510_v8 }
 0x3b2   :  { %v684_v12 = vmul.f32 %v1250_v1, %v674_v2  ;;  %v1813_v16 = vadd.f32 %v683_v63, %v1639_v26  ;;  %v1511_v63 = vld [vmem:[%s1975_s1 + $0xb8] sm:$0xff]   ;;  %1378 = vmatpush3.bf16.msra.mxu1 %v1510_v8  ;;  %v1512_v2 = vld [vmem:[%s1975_s1 + $0xc0] sm:$0xff]  }
 0x3b3   :  { %v1816_v17 = vadd.f32 %v681_v10, %v1641_v27  ;;  %v682_v18 = vmul.f32 %v1250_v1, %v666_v11  ;;  %1379 = vmatprep.subr.bf16.mxu1 %v1511_v63 }
 0x3b4   :  { %v1819_v19 = vadd.f32 %v684_v12, %v1643_v29  ;;  %v716_v23 = vrot.slane %v1813_v16, 1 }
 0x3b5   :  { %v1822_v20 = vadd.f32 %v682_v18, %v1645_v31  ;;  %v714_v21 = vrot.slane %v1816_v17, 1 }
 0x3b6   :  { %v1450_v22 = vpack.i.bf16 %v1819_v19, %v1813_v16  ;;  %v717_v26 = vrot.slane %v1819_v19, 1  ;;  %1380 = vmatpush3.bf16.msra.mxu1 %v1511_v63 }
 0x3b7   :  { %v1455_v27 = vpack.i.bf16 %v1822_v20, %v1816_v17  ;;  %v715_v29 = vrot.slane %v1822_v20, 1  ;;  %1381 = vmatprep.subr.bf16.mxu1 %v1512_v2 }
 0x3b8   :  { %1451 = vrot.lane.b32.xlu1 %v1450_v22, %s1559_s10  ;;  %v721_v31 = vsel %vm289_vm5, %v717_v26, %v714_v21  ;;  %v718_v28 = vsel %vm289_vm5, %v716_v23, %v717_v26 }
 0x3b9   :  { %1456 = vrot.lane.b32.xlu0 %v1455_v27, %s1559_s10  ;;  %v725_v24 = vmul.f32 %v1662_v40, %v721_v31  ;;  %v719_v25 = vsel %vm289_vm5, %v715_v29, %v716_v23  ;;  %v720_v33 = vsel %vm289_vm5, %v714_v21, %v715_v29 }
 0x3ba   :  { %v723_v30 = vmul.f32 %v1656_v37, %v719_v25  ;;  %1382 = vmatpush3.bf16.msra.mxu1 %v1512_v2 }
 0x3bb   :  { %v1465_v32 = vpack.i.bf16 %v725_v24, %v718_v28 }
 0x3bc   :  { %v1460_v34 = vpack.i.bf16 %v723_v30, %v720_v33 }
 0x3bd   :  { %1466 = vrot.lane.b32.xlu1 %v1465_v32, %s1560_s11 }
 0x3be   :  { %1461 = vrot.lane.b32.xlu0 %v1460_v34, %s1560_s11 }
 0x3c1   :  { %872 = vrot.lane.b32.xlu1 %v1730_v43, %s1560_s11  ;;  %v703_v43 = vrot.slane %v1822_v20, 7 }
 0x3c2   :  { %870 = vrot.lane.b32.xlu0 %v1741_v58, %s1560_s11  ;;  %v702_v58 = vrot.slane %v1816_v17, 7 }
 0x3c4   :  { %v708_v45 = vsel %vm276_vm7, %v702_v58, %v703_v43 }
 0x3c5   :  { %874 = vrot.lane.b32.xlu1 %v1737_v50, %s1560_s11  ;;  %v705_v50 = vrot.slane %v1819_v19, 7 }
 0x3c6   :  { %868 = vrot.lane.b32.xlu0 %v1733_v46, %s1560_s11  ;;  %v704_v46 = vrot.slane %v1813_v16, 7 }
 0x3c8   :  { %v706_v41 = vsel %vm276_vm7, %v704_v46, %v705_v50 }
 0x3c9   :  { %888 = vrot.lane.b32.xlu1 %v1680_v51, %s1559_s10  ;;  %v707_v51 = vsel %vm276_vm7, %v703_v43, %v704_v46 }
 0x3ca   :  { %886 = vrot.lane.b32.xlu0 %v1685_v56, %s1559_s10  ;;  %v712_v42 = vmul.f32 %v1616_v15, %v707_v51 }
 0x3cd   :  { %890 = vrot.lane.b32.xlu1 %v1682_v54, %s1559_s10  ;;  %v709_v54 = vsel %vm276_vm7, %v705_v50, %v702_v58 }
 0x3ce   :  { %884 = vrot.lane.b32.xlu0 %v1687_v57, %s1559_s10  ;;  %v710_v47 = vmul.f32 %v1612_v13, %v709_v54 }
 0x42a   :  { %v1452_v35 = vpop.permute.xlu1 %1451 }
 0x42b   :  { %v1457_v36 = vpop.permute.xlu0 %1456  ;;  %v1454_v56 = vunpack.i.h.bf16 %v1452_v35  ;;  %v1453_v38 = vunpack.i.l.bf16 %v1452_v35 }
 0x42c   :  { %v1459_v39 = vunpack.i.h.bf16 %v1457_v36  ;;  %v1458_v57 = vunpack.i.l.bf16 %v1457_v36 }
 0x42d   :  { %v760_v53 = vsel %vm330_vm8, %v712_v42, %v1453_v38  ;;  %v761_v55 = vsel %vm330_vm8, %v706_v41, %v1454_v56 }
 0x42e   :  { %v758_v62 = vsel %vm330_vm8, %v710_v47, %v1458_v57  ;;  %v759_v0 = vsel %vm330_vm8, %v708_v45, %v1459_v39 }
 0x42f   :  { %v1467_v44 = vpop.permute.xlu1 %1466 }
 0x430   :  { %v1469_v48 = vunpack.i.h.bf16 %v1467_v44  ;;  %v1468_v49 = vunpack.i.l.bf16 %v1467_v44  ;;  %v1462_v52 = vpop.permute.xlu0 %1461 }
 0x431   :  { %v1464_v60 = vunpack.i.h.bf16 %v1462_v52  ;;  %v1463_v61 = vunpack.i.l.bf16 %v1462_v52 }
 0x432   :  { %v765_v1 = vsel %vm335_vm9, %v761_v55, %v1469_v48  ;;  %v764_v3 = vsel %vm335_vm9, %v760_v53, %v1468_v49 }
 0x433   :  { %v762_v5 = vsel %vm335_vm9, %v758_v62, %v1463_v61  ;;  %v763_v6 = vsel %vm335_vm9, %v759_v0, %v1464_v60  ;;  %v767_v59 = vpack.c.bf16 %v765_v1, %v764_v3  ;;  %v873_v10 = vpop.permute.xlu1 %872  ;;  %v1513_v0 = vld [vmem:[%s1975_s1 + $0xc8] sm:$0xff]  }
 0x434   :  { %v766_v7 = vpack.c.bf16 %v763_v6, %v762_v5  ;;  %v871_v4 = vpop.permute.xlu0 %870  ;;  %1383 = vmatprep.subr.bf16.mxu1 %v1513_v0  ;;  %v1514_v6 = vld [vmem:[%s1975_s1 + $0xd0] sm:$0xff]  }
 0x435   :  { %1384 = vmatpush3.bf16.msra.mxu1 %v1513_v0 }
 0x436   :  { %1373 = vmatprep.mubr.msk.bf16.mxu0 %vm383_vm10, %v766_v7  ;;  %1385 = vmatprep.subr.bf16.mxu1 %v1514_v6 }
 0x437   :  { %1374 = vmatmul.mubr.msk.bf16.vlgmr.msra.gmra.mrb[8].mxu0 %vm383_vm10, %v767_v59  ;;  %v875_v12 = vpop.permute.xlu1 %874 }
 0x438   :  { %v869_v11 = vpop.permute.xlu0 %868 }
 0x439   :  { %1386 = vmatpush3.bf16.msra.mxu1 %v1514_v6 }
 0x43b   :  { %v889_v21 = vpop.permute.xlu1 %888 }
 0x43c   :  { %v887_v18 = vpop.permute.xlu0 %886 }
 0x43f   :  { %v891_v43 = vpop.permute.xlu1 %890 }
 0x440   :  { %v885_v32 = vpop.permute.xlu0 %884 }
 0x50a   :  { %v1375_v22 = vpop.f32.mrb[8].mxu0 }
 0x50b   :  { %v858_v26 = vadd.f32 %v1375_v22, %v1251_v14  ;;  %v849_v27 = vpop.f32.mrb[9].mxu0 }
 0x50c   :  { %v850_v23 = vadd.f32 %v1251_v14, %v849_v27  ;;  %v1376_v29 = vpop.f32.mrb[10].mxu0 }
 0x50d   :  { %v882_v31 = vmul.f32 %v873_v10, %v858_v26  ;;  %v861_v24 = vadd.f32 %v1376_v29, %v1251_v14  ;;  %v852_v25 = vpop.f32.mrb[11].mxu0 }
 0x50e   :  { %v880_v28 = vmul.f32 %v869_v11, %v850_v23  ;;  %v853_v30 = vadd.f32 %v1251_v14, %v852_v25  ;;  %v1515_v14 = vld [vmem:[%s1975_s1 + $0xd8] sm:$0xff]  }
 0x50f   :  { %v898_v33 = vadd.f32 %v889_v21, %v882_v31  ;;  %v883_v34 = vmul.f32 %v875_v12, %v861_v24  ;;  %1387 = vmatprep.subr.bf16.mxu1 %v1515_v14 }
 0x510   :  { %v896_v58 = vadd.f32 %v885_v32, %v880_v28  ;;  %v881_v50 = vmul.f32 %v871_v4, %v853_v30  ;;  %1388 = vmatpush3.bf16.msra.mxu1 %v1515_v14 }
 0x511   :  { %v902_v46 = vmul.f32 %v898_v33, %v898_v33  ;;  %v899_v35 = vadd.f32 %v891_v43, %v883_v34 }
 0x512   :  { %v900_v36 = vmul.f32 %v896_v58, %v896_v58  ;;  %v897_v51 = vadd.f32 %v887_v18, %v881_v50 }
 0x513   :  { %v906_v56 = vmul.f32 %v902_v46, %v898_v33  ;;  %v903_v38 = vmul.f32 %v899_v35, %v899_v35 }
 0x514   :  { %v904_v54 = vmul.f32 %v900_v36, %v896_v58  ;;  %v901_v39 = vmul.f32 %v897_v51, %v897_v51 }
 0x515   :  { %v910_v57 = vmul.f32 0.044715, %v906_v56  ;;  %v907_v41 = vmul.f32 %v903_v38, %v899_v35 }
 0x516   :  { %v908_v42 = vmul.f32 0.044715, %v904_v54  ;;  %v905_v44 = vmul.f32 %v901_v39, %v897_v51 }
 0x517   :  { %v914_v45 = vadd.f32 %v910_v57, %v898_v33  ;;  %v911_v47 = vmul.f32 0.044715, %v907_v41 }
 0x518   :  { %v912_v48 = vadd.f32 %v908_v42, %v896_v58  ;;  %v909_v49 = vmul.f32 0.044715, %v905_v44 }
 0x519   :  { %v918_v52 = vmul.f32 0.7978846, %v914_v45  ;;  %v915_v53 = vadd.f32 %v911_v47, %v899_v35 }
 0x51a   :  { %v916_v55 = vmul.f32 0.7978846, %v912_v48  ;;  %v913_v60 = vadd.f32 %v909_v49, %v897_v51 }
 0x51b   :  { %1526 = vtanh.f32 %v918_v52  ;;  %v919_v61 = vmul.f32 0.7978846, %v915_v53 }
 0x51c   :  { %1528 = vtanh.f32 %v916_v55  ;;  %v917_v62 = vmul.f32 0.7978846, %v913_v60 }
 0x51d   :  { %1530 = vtanh.f32 %v919_v61 }
 0x51e   :  { %1532 = vtanh.f32 %v917_v62 }
 0x525   :  { %v1527_v1 = vpop.eup %1526 }
 0x526   :  { %v1529_v3 = vpop.eup %1528  ;;  %v926_v5 = vadd.f32 1.0, %v1527_v1 }
 0x527   :  { %v1531_v7 = vpop.eup %1530  ;;  %v924_v59 = vadd.f32 1.0, %v1529_v3 }
 0x528   :  { %v1533_v8 = vpop.eup %1532  ;;  %v927_v63 = vadd.f32 1.0, %v1531_v7  ;;  %v930_v2 = vmul.f32 0.5, %v926_v5  ;;  %v1516_v7 = vld [vmem:[%s1975_s1 + $0x8] sm:$0xff]  }
 0x529   :  { %v925_v4 = vadd.f32 1.0, %v1533_v8  ;;  %v928_v10 = vmul.f32 0.5, %v924_v59  ;;  %1393 = vmatprep.subr.bf16.mxu0 %v1516_v7  ;;  %v1517_v59 = vld [vmem:[%s1975_s1 + $0x10] sm:$0xff]  }
 0x52a   :  { %v931_v11 = vmul.f32 0.5, %v927_v63  ;;  %v934_v12 = vmul.f32 %v930_v2, %v898_v33  ;;  %1394 = vmatpush3.bf16.msra.mxu0 %v1516_v7  ;;  %v1260_v8 = vld [vmem:[%s1976_s2 + $0x30] ss:$0 sm:$0xff]  ;;  %v1269_v63 = vld [vmem:[%s1976_s2 + $0x40] ss:$0 sm:$0xff] }
 0x52b   :  { %v929_v18 = vmul.f32 0.5, %v925_v4  ;;  %v932_v21 = vmul.f32 %v928_v10, %v896_v58  ;;  %1395 = vmatprep.subr.bf16.mxu0 %v1517_v59 }
 0x52c   :  { %v935_v22 = vmul.f32 %v931_v11, %v899_v35  ;;  %v962_v23 = vrot.slane %v934_v12, 1  ;;  %v950_v25 = vrot.slane %v934_v12, 7 }
 0x52d   :  { %v933_v26 = vmul.f32 %v929_v18, %v897_v51  ;;  %v960_v27 = vrot.slane %v932_v21, 1  ;;  %v948_v29 = vrot.slane %v932_v21, 7 }
 0x52e   :  { %v1470_v31 = vpack.i.bf16 %v935_v22, %v934_v12  ;;  %v963_v24 = vrot.slane %v935_v22, 1  ;;  %v951_v28 = vrot.slane %v935_v22, 7  ;;  %1396 = vmatpush3.bf16.msra.mxu0 %v1517_v59 }
 0x52f   :  { %v949_v30 = vrot.slane %v933_v26, 7  ;;  %v1475_v32 = vpack.i.bf16 %v933_v26, %v932_v21  ;;  %v961_v33 = vrot.slane %v933_v26, 1 }
 0x530   :  { %1471 = vrot.lane.b32.xlu1 %v1470_v31, %s1559_s10  ;;  %v964_v34 = vsel %vm289_vm5, %v962_v23, %v963_v24  ;;  %v967_v43 = vsel %vm289_vm5, %v963_v24, %v960_v27  ;;  %v952_v58 = vsel %vm276_vm7, %v950_v25, %v951_v28  ;;  %v955_v50 = vsel %vm276_vm7, %v951_v28, %v948_v29 }
 0x531   :  { %1476 = vrot.lane.b32.xlu0 %v1475_v32, %s1559_s10  ;;  %v971_v46 = vmul.f32 %v1662_v40, %v967_v43  ;;  %v965_v35 = vsel %vm289_vm5, %v961_v33, %v962_v23  ;;  %v966_v36 = vsel %vm289_vm5, %v960_v27, %v961_v33  ;;  %v953_v51 = vsel %vm276_vm7, %v949_v30, %v950_v25  ;;  %v1270_v32 = vld [vmem:[%s1976_s2 + $0x8] ss:$0 sm:$0xff] }
 0x532   :  { %v969_v56 = vmul.f32 %v1656_v37, %v965_v35  ;;  %v954_v38 = vsel %vm276_vm7, %v948_v29, %v949_v30  ;;  %v958_v47 = vmul.f32 %v1616_v15, %v953_v51  ;;  %v956_v37 = vmul.f32 %v1612_v13, %v955_v50 }
 0x533   :  { %v1485_v54 = vpack.i.bf16 %v971_v46, %v964_v34 }
 0x534   :  { %v1480_v39 = vpack.i.bf16 %v969_v56, %v966_v36 }
 0x535   :  { %1486 = vrot.lane.b32.xlu1 %v1485_v54, %s1560_s11 }
 0x536   :  { %1481 = vrot.lane.b32.xlu0 %v1480_v39, %s1560_s11 }
 0x5a2   :  { %v1472_v40 = vpop.permute.xlu1 %1471 }
 0x5a3   :  { %v1477_v57 = vpop.permute.xlu0 %1476  ;;  %v1474_v41 = vunpack.i.h.bf16 %v1472_v40  ;;  %v1473_v42 = vunpack.i.l.bf16 %v1472_v40 }
 0x5a4   :  { %v1479_v44 = vunpack.i.h.bf16 %v1477_v57  ;;  %v1478_v45 = vunpack.i.l.bf16 %v1477_v57 }
 0x5a5   :  { %v1006_v53 = vsel %vm330_vm8, %v958_v47, %v1473_v42  ;;  %v1007_v55 = vsel %vm330_vm8, %v952_v58, %v1474_v41 }
 0x5a6   :  { %v1004_v62 = vsel %vm330_vm8, %v956_v37, %v1478_v45  ;;  %v1005_v0 = vsel %vm330_vm8, %v954_v38, %v1479_v44 }
 0x5a7   :  { %v1487_v48 = vpop.permute.xlu1 %1486 }
 0x5a8   :  { %v1489_v49 = vunpack.i.h.bf16 %v1487_v48  ;;  %v1488_v9 = vunpack.i.l.bf16 %v1487_v48  ;;  %v1482_v52 = vpop.permute.xlu0 %1481 }
 0x5a9   :  { %v1484_v60 = vunpack.i.h.bf16 %v1482_v52  ;;  %v1483_v61 = vunpack.i.l.bf16 %v1482_v52 }
 0x5aa   :  { %v1011_v1 = vsel %vm335_vm9, %v1007_v55, %v1489_v49  ;;  %v1010_v15 = vsel %vm335_vm9, %v1006_v53, %v1488_v9 }
 0x5ab   :  { %v1013_v3 = vpack.c.bf16 %v1011_v1, %v1010_v15  ;;  %v1008_v13 = vsel %vm335_vm9, %v1004_v62, %v1483_v61  ;;  %v1009_v5 = vsel %vm335_vm9, %v1005_v0, %v1484_v60 }
 0x5ac   :  { %v1012_v6 = vpack.c.bf16 %v1009_v5, %v1008_v13 }
 0x5ae   :  { %1389 = vmatprep.mubr.msk.bf16.mxu1 %vm383_vm10, %v1012_v6 }
 0x5af   :  { %1390 = vmatmul.mubr.msk.bf16.vlgmr.msra.gmra.mrb[8].mxu1 %vm383_vm10, %v1013_v3 }
 0x682   :  { %v1391_v2 = vpop.f32.mrb[8].mxu1 }
 0x683   :  { %v1104_v4 = vadd.f32 %v1391_v2, %v1260_v8  ;;  %v1095_v10 = vpop.f32.mrb[9].mxu1 }
 0x684   :  { %v1096_v11 = vadd.f32 %v1260_v8, %v1095_v10  ;;  %v1392_v12 = vpop.f32.mrb[10].mxu1 }
 0x685   :  { %v1116_v14 = vmul.f32 %v1269_v63, %v1104_v4  ;;  %v1107_v18 = vadd.f32 %v1392_v12, %v1260_v8  ;;  %v1098_v21 = vpop.f32.mrb[11].mxu1 }
 0x686   :  { %v1114_v22 = vmul.f32 %v1269_v63, %v1096_v11  ;;  %v1099_v26 = vadd.f32 %v1260_v8, %v1098_v21 }
 0x687   :  { %v1117_v27 = vmul.f32 %v1269_v63, %v1107_v18  ;;  %v1120_v29 = vadd.f32 %v1116_v14, %v1813_v16 }
 0x688   :  { %v1115_v23 = vmul.f32 %v1269_v63, %v1099_v26  ;;  %v1118_v24 = vadd.f32 %v1114_v22, %v1816_v17 }
 0x689   :  { %v1121_v31 = vadd.f32 %v1117_v27, %v1819_v19 }
 0x68a   :  { %v1119_v25 = vadd.f32 %v1115_v23, %v1822_v20 }
 0x68b   :  { %v1128_v28 = vpack.c.bf16 %v1121_v31, %v1120_v29 }
 0x68c   :  { %v1127_v30 = vpack.c.bf16 %v1119_v25, %v1118_v24 }
 0x68e   :  { %1397 = vmatprep.mubr.msk.bf16.mxu0 %vm330_vm8, %v1127_v30 }
 0x68f   :  { %1398 = vmatmul.mubr.msk.bf16.vlgmr.msra.gmra.mrb[12].mxu0 %vm330_vm8, %v1128_v28 }
 0x762   :  { %v1399_v33 = vpop.f32.mrb[12].mxu0 }
 0x763   :  { %v1194_v34 = vadd.f32 %v1399_v33, %v1270_v32  ;;  %v1185_v43 = vpop.f32.mrb[13].mxu0 }
 0x764   :  { %v1186_v16 = vadd.f32 %v1270_v32, %v1185_v43  ;;  %v1400_v19 = vpop.f32.mrb[14].mxu0 }
 0x765   :  { %1202 = vst [vmem:[#allocation2 + $0x10] sm:$0xff] %v1194_v34  ;;  %v1197_v17 = vadd.f32 %v1400_v19, %v1270_v32  ;;  %v1188_v20 = vpop.f32.mrb[15].mxu0 }
 0x766   :  { %1200 = vst [vmem:[#allocation2] sm:$0xff] %v1186_v16  ;;  %v1189_v58 = vadd.f32 %v1270_v32, %v1188_v20 }
 0x767   :  { %1203 = vst [vmem:[#allocation2 + $0x18] sm:$0xff] %v1197_v17 }
 0x768   :  { %1201 = vst [vmem:[#allocation2 + $0x8] sm:$0xff] %v1189_v58 }
 0x769   :  { %1545 = shalt.err (!%p1542_p4)
}
 0x76a   :  { %s1546_s18 = scalar_lea.hbm %s1977_s3, 512 }
 0x76b   :  { %p1547_p5 = scmp.ne.s32.totalorder %s1977_s3, %s1546_s18  ;;  %p1550_p6 = scmp.lt.u32.totalorder %s1546_s18, %s1977_s3 }
 0x76d   :  { %p1552_p7 = pnand %p1550_p6, %p1547_p5 }
 0x76f   :  { %1555 = shalt.err (!%p1552_p7)
}
 0x770   :  { %s1563_s23 = smov 128   ;;  %s1564_s0 = smov 8  }
 0x771   :  { %1215 = dma.vmem_to_hbm [thread:$0]  %s1210_s15, 512, %s1977_s3, [#allocation3], %s1563_s23, %s1563_s23, %s1564_s0  }
 0x772   :  { %1556 = dma.done.wait [#allocation3], 512  }
 0x773   :  { %1557 = vsyncadd [#allocation3], 4294966784 }
 0x774   :  { %1219 = vsyncpa [#allocation3], 1 }

</bundles_post_ra>
